<compile_context>
chip_gen: v7x
topology: tpu7x:2x2x1
jax: 0.10.0
libtpu: 0.0.40
codegen_flags: <defaults>
</compile_context>

<pallas_src>
import functools
import math

import jax
import jax.numpy as jnp
from jax import lax
from jax.experimental import pallas as pl
from jax.experimental.pallas import tpu as pltpu

# Safe on every generation: above v5e/v6e scoped defaults, only half of the
# 64 MiB/TC physical VMEM on v7x; these kernels need well under 16 MiB.
_VMEM_LIMIT_BYTES = 32 * 1024 * 1024


# ----------------------------------------------------------------------------
# Tiling helpers
# ----------------------------------------------------------------------------
def _pick_tile(dim, target, aligns):
    """Largest tile <= target dividing `dim`, preferring coarser alignments.

    Falls back to the full dimension (always a legal Pallas block dim)."""
    if dim <= target:
        return dim
    for align in aligns:
        t = (target // align) * align
        while t >= align:
            if dim % t == 0:
                return t
            t -= align
    return dim


def _pick_head_block(h, d_key, target_cols=512):
    """Heads batched per attention grid step.

    Pick the LARGEST divisor of h whose column width (hb*d_key) is a multiple
    of 128 lanes and <= target_cols (lane-dense loads/stores, big DMAs).
    Otherwise use all heads so the block spans the full d_model (also legal)."""
    best = None
    for hb in range(1, h + 1):
        if h % hb:
            continue
        cols = hb * d_key
        if cols % 128 == 0 and cols <= target_cols:
            best = hb
    if best is not None:
        return best, best * d_key
    return h, h * d_key


# ----------------------------------------------------------------------------
# Tiled linear (y = x @ W + b) kernel -- bf16 MXU operands, f32 accumulator
# ----------------------------------------------------------------------------
def _linear_kernel(x_ref, w_ref, b_ref, o_ref, acc_ref):
    k = pl.program_id(2)

    @pl.when(k == 0)
    def _():
        acc_ref[...] = jnp.zeros_like(acc_ref)

    acc_ref[...] += jnp.dot(
        x_ref[...].astype(jnp.bfloat16),
        w_ref[...].astype(jnp.bfloat16),
        preferred_element_type=jnp.float32,
    )

    @pl.when(k == pl.num_programs(2) - 1)
    def _():
        o_ref[...] = (acc_ref[...] + b_ref[...].astype(jnp.float32)).astype(o_ref.dtype)


def pallas_linear(x2d, w, b, *, tm_target=512, tn_target=512, tk_target=1024):
    """x2d: (N, Din), w: (Din, Dout), b: (Dout,) -> (N, Dout)."""
    n, d_in = x2d.shape
    d_out = w.shape[1]
    tm = _pick_tile(n, tm_target, (16, 8))          # 16-aligned for bf16 packing
    tn = _pick_tile(d_out, tn_target, (256, 128))   # 256-preferred (v6e/v7x MXU)
    tk = _pick_tile(d_in, tk_target, (256, 128))
    b2d = b.reshape(1, d_out)
    itemsize = jnp.dtype(x2d.dtype).itemsize
    cost = pl.CostEstimate(
        flops=2 * n * d_in * d_out,
        transcendentals=0,
        bytes_accessed=itemsize * (n * d_in + d_in * d_out + d_out + n * d_out),
    )
    return pl.pallas_call(
        _linear_kernel,
        out_shape=jax.ShapeDtypeStruct((n, d_out), x2d.dtype),
        grid=(n // tm, d_out // tn, d_in // tk),
        in_specs=[
            pl.BlockSpec((tm, tk), lambda i, j, k: (i, k)),
            pl.BlockSpec((tk, tn), lambda i, j, k: (k, j)),
            pl.BlockSpec((1, tn), lambda i, j, k: (0, j)),
        ],
        out_specs=pl.BlockSpec((tm, tn), lambda i, j, k: (i, j)),
        scratch_shapes=[pltpu.VMEM((tm, tn), jnp.float32)],
        compiler_params=pltpu.CompilerParams(
            dimension_semantics=("parallel", "parallel", "arbitrary"),
            vmem_limit_bytes=_VMEM_LIMIT_BYTES,
        ),
        cost_estimate=cost,
    )(x2d, w, b2d)


# ----------------------------------------------------------------------------
# Flash-style head-batched scaled-dot-product attention kernel
# ----------------------------------------------------------------------------
def _attn_q_map(b, g, qi, kv, *, offset):
    return (b, qi, g + offset)


def _attn_kv_map(b, g, qi, kv, *, offset):
    return (b, kv, g + offset)


def _flash_attn_kernel(q_ref, k_ref, v_ref, o_ref, m_ref, l_ref, acc_ref, *,
                       heads_per_block, d_key, scale):
    """Online-softmax attention for `heads_per_block` heads of one batch row.

    Blocks are (1, tile, heads_per_block*d_key); heads sit in contiguous
    column groups of the lane dim, so no HBM-level head transpose is needed.
    The kv grid axis (last) is the reduction axis; m/l/acc live in VMEM
    scratch and the output is written once, lane-dense, at the last kv step."""
    kv = pl.program_id(3)

    @pl.when(kv == 0)
    def _():
        m_ref[...] = jnp.full_like(m_ref, -jnp.inf)
        l_ref[...] = jnp.zeros_like(l_ref)
        acc_ref[...] = jnp.zeros_like(acc_ref)

    for hh in range(heads_per_block):
        lo = hh * d_key
        hi = lo + d_key
        # Per-head Ref slices (no full-width f32 copies held live across heads).
        q = (q_ref[0, :, lo:hi].astype(jnp.float32) * scale).astype(jnp.bfloat16)
        k = k_ref[0, :, lo:hi].astype(jnp.bfloat16)
        v = v_ref[0, :, lo:hi].astype(jnp.bfloat16)

        # scores = (q*scale) @ k^T without materializing k.T (contract last dims).
        s = lax.dot_general(
            q, k, dimension_numbers=(((1,), (1,)), ((), ())),
            preferred_element_type=jnp.float32,
        )
        m_prev = m_ref[hh]                                   # (tq, 1)
        m_new = jnp.maximum(m_prev, jnp.max(s, axis=-1, keepdims=True))
        alpha = jnp.exp(m_prev - m_new)
        p = jnp.exp(s - m_new)
        l_ref[hh] = alpha * l_ref[hh] + jnp.sum(p, axis=-1, keepdims=True)
        acc_ref[:, lo:hi] = alpha * acc_ref[:, lo:hi] + jnp.dot(
            p.astype(jnp.bfloat16), v, preferred_element_type=jnp.float32)
        m_ref[hh] = m_new

    @pl.when(kv == pl.num_programs(3) - 1)
    def _():
        for hh in range(heads_per_block):
            lo = hh * d_key
            hi = lo + d_key
            inv = pl.reciprocal(l_ref[hh], approx=True)      # EUP, (tq, 1)
            acc_ref[:, lo:hi] = acc_ref[:, lo:hi] * inv
        # Single lane-dense store of the whole (tq, heads_per_block*d_key) block.
        o_ref[0] = acc_ref[...].astype(o_ref.dtype)


def pallas_flash_attention(q, k, v, *, h, hb=None, col_block_offsets=(0, 0, 0),
                           out_d_model=None, tq_target=256, tkv_target=512):
    """q/k/v: (B, S, P) with heads packed along the last dim.

    P may exceed d_model (packed QKV buffer); `col_block_offsets` give each
    operand's starting column-block so the kernel reads the packed buffer in
    place.  Output: (B, S, d_model)."""
    bsz, s, _ = q.shape
    d_model = out_d_model if out_d_model is not None else q.shape[-1]
    d_key = d_model // h
    if hb is None:
        hb, cols = _pick_head_block(h, d_key)
    else:
        cols = hb * d_key

    tq = _pick_tile(s, tq_target, (16, 8))
    tkv = _pick_tile(s, tkv_target, (16, 8))
    scale = 1.0 / math.sqrt(d_key)
    q_off, k_off, v_off = col_block_offsets

    kernel = functools.partial(
        _flash_attn_kernel, heads_per_block=hb, d_key=d_key, scale=scale)
    in_specs = [
        pl.BlockSpec((1, tq, cols), functools.partial(_attn_q_map, offset=q_off)),
        pl.BlockSpec((1, tkv, cols), functools.partial(_attn_kv_map, offset=k_off)),
        pl.BlockSpec((1, tkv, cols), functools.partial(_attn_kv_map, offset=v_off)),
    ]
    out_spec = pl.BlockSpec((1, tq, cols), functools.partial(_attn_q_map, offset=0))
    itemsize = jnp.dtype(q.dtype).itemsize
    cost = pl.CostEstimate(
        flops=4 * bsz * h * s * s * d_key,
        transcendentals=bsz * h * s * s,
        bytes_accessed=itemsize * 4 * bsz * s * d_model,
    )
    return pl.pallas_call(
        kernel,
        out_shape=jax.ShapeDtypeStruct((bsz, s, d_model), q.dtype),
        grid=(bsz, h // hb, s // tq, s // tkv),
        in_specs=in_specs,
        out_specs=out_spec,
        scratch_shapes=[
            pltpu.VMEM((hb, tq, 1), jnp.float32),   # running max m
            pltpu.VMEM((hb, tq, 1), jnp.float32),   # running denom l
            pltpu.VMEM((tq, cols), jnp.float32),    # running numerator (all heads)
        ],
        compiler_params=pltpu.CompilerParams(
            dimension_semantics=("parallel", "parallel", "parallel", "arbitrary"),
            vmem_limit_bytes=_VMEM_LIMIT_BYTES,
        ),
        cost_estimate=cost,
    )(q, k, v)


# ----------------------------------------------------------------------------
# MultiHeadAttention forward
# ----------------------------------------------------------------------------
def multi_head_attention(params, query, key, value, mask=None, *, h):
    """query/key/value: (B, S, d_model) -> (B, S, d_model)."""
    del mask  # reference masked_fill is non-in-place => mask has no effect.
    b, s, d_model = query.shape
    d_key = d_model // h
    hb, cols = _pick_head_block(h, d_key)

    fuse_qkv = (query is key) and (key is value) and (cols % 128 == 0)

    if fuse_qkv:
        # Self-attention fast path: one fused (d_model, 3*d_model) projection
        # with weights pre-concatenated at init time; attention reads q/k/v
        # straight out of the packed result via column-block offsets.
        if "w_qkv_w" in params:
            w_qkv, b_qkv = params["w_qkv_w"], params["w_qkv_b"]
        else:  # fallback if caller did not pre-pack (extra HBM copy per call)
            w_qkv = jnp.concatenate(
                [params["w_query_w"], params["w_key_w"], params["w_value_w"]], axis=1)
            b_qkv = jnp.concatenate(
                [params["w_query_b"], params["w_key_b"], params["w_value_b"]], axis=0)
        qkv = pallas_linear(query.reshape(b * s, d_model), w_qkv, b_qkv)
        qkv = qkv.reshape(b, s, 3 * d_model)
        nblk = d_model // cols
        attn = pallas_flash_attention(
            qkv, qkv, qkv, h=h, hb=hb,
            col_block_offsets=(0, nblk, 2 * nblk), out_d_model=d_model)
    else:
        def proj(x, name):
            y = pallas_linear(
                x.reshape(b * s, d_model), params[f"{name}_w"], params[f"{name}_b"])
            return y.reshape(b, s, d_model)

        attn = pallas_flash_attention(
            proj(query, "w_query"), proj(key, "w_key"), proj(value, "w_value"),
            h=h, hb=hb)

    out = pallas_linear(attn.reshape(b * s, d_model),
                        params["w_o_w"], params["w_o_b"])
    return out.reshape(b, s, d_model)


def init_params(key, d_model):
    """nn.Linear-style init; weights stored pre-transposed as (d_in, d_out).

    The fused QKV weight/bias are pre-concatenated ONCE here so the forward
    never re-materializes a (d_model, 3*d_model) HBM copy per call."""
    params = {}
    bound = 1.0 / math.sqrt(d_model)
    names = ["w_query", "w_key", "w_value", "w_o"]
    keys = jax.random.split(key, 2 * len(names))
    for i, name in enumerate(names):
        params[f"{name}_w"] = jax.random.uniform(
            keys[2 * i], (d_model, d_model), jnp.float32, -bound, bound)
        params[f"{name}_b"] = jax.random.uniform(
            keys[2 * i + 1], (d_model,), jnp.float32, -bound, bound)
    params["w_qkv_w"] = jnp.concatenate(
        [params["w_query_w"], params["w_key_w"], params["w_value_w"]], axis=1)
    params["w_qkv_b"] = jnp.concatenate(
        [params["w_query_b"], params["w_key_b"], params["w_value_b"]], axis=0)
    return params


def reference_forward(params, query, key, value, h):
    """Pure-JAX reference of the intended PyTorch forward (verification)."""
    b, s, d_model = query.shape
    d_key = d_model // h

    def lin(x, name):
        return x @ params[f"{name}_w"] + params[f"{name}_b"]

    def heads(x):
        return x.reshape(b, s, h, d_key).transpose(0, 2, 1, 3)

    q = heads(lin(query, "w_query"))
    k = heads(lin(key, "w_key"))
    v = heads(lin(value, "w_value"))
    scores = jnp.einsum("bhqd,bhkd->bhqk", q, k) / jnp.sqrt(jnp.float32(d_key))
    p = jax.nn.softmax(scores, axis=-1)
    o = jnp.einsum("bhqk,bhkd->bhqd", p, v)
    o = o.transpose(0, 2, 1, 3).reshape(b, s, d_model)
    return lin(o, "w_o")


def _check(out, ref, tag):
    # bf16 MXU operands => compare with a norm-relative criterion + loose atol.
    max_abs = float(jnp.max(jnp.abs(out - ref)))
    rel = float(jnp.linalg.norm(out - ref) / (jnp.linalg.norm(ref) + 1e-12))
    assert max_abs < 7.5e-2 and rel < 2e-2, (tag, max_abs, rel)


if __name__ == "__main__":
    keys = jax.random.split(jax.random.PRNGKey(0), 8)

    # --- test 1: small, distinct q/k/v (general path, full-dim blocks) ------
    batch, seq, d_model, h = 2, 8, 32, 4
    params = init_params(keys[0], d_model)
    query = jax.random.normal(keys[1], (batch, seq, d_model), jnp.float32)
    key = jax.random.normal(keys[2], (batch, seq, d_model), jnp.float32)
    value = jax.random.normal(keys[3], (batch, seq, d_model), jnp.float32)

    out = jax.block_until_ready(
        multi_head_attention(params, query, key, value, mask=None, h=h))
    assert out.shape == (batch, seq, d_model)
    _check(out, reference_forward(params, query, key, value, h), "small")

    # --- test 2: larger self-attention (fused QKV + flash attention grid) ---
    batch2, seq2, d_model2, h2 = 2, 128, 256, 4
    params2 = init_params(keys[4], d_model2)
    x2 = jax.random.normal(keys[5], (batch2, seq2, d_model2), jnp.float32)

    out2 = jax.block_until_ready(
        multi_head_attention(params2, x2, x2, x2, mask=None, h=h2))
    assert out2.shape == (batch2, seq2, d_model2)
    _check(out2, reference_forward(params2, x2, x2, x2, h2), "fused")

    print("KERNEL_OK")
</pallas_src>

<mosaic_0001>
module attributes {stable_mosaic.version = 11 : i64} {
  func.func @_linear_kernel(%arg0: i32, %arg1: i32, %arg2: i32, %arg3: memref<16x32xf32, #tpu.memory_space<vmem>>, %arg4: memref<32x32xf32, #tpu.memory_space<vmem>>, %arg5: memref<1x32xf32, #tpu.memory_space<vmem>>, %arg6: memref<16x32xf32, #tpu.memory_space<vmem>>, %arg7: memref<16x32xf32, #tpu.memory_space<vmem>>) attributes {dimension_semantics = [#tpu.dimension_semantics<parallel>, #tpu.dimension_semantics<parallel>, #tpu.dimension_semantics<arbitrary>], iteration_bounds = array<i64: 1, 1, 1>, scalar_prefetch = 0 : i64, scratch_operands = 1 : i64, tpu.core_type = #tpu.core_type<tc>, window_params = [{transform_indices = @transform_0, window_bounds = array<i64: 16, 32>}, {transform_indices = @transform_1, window_bounds = array<i64: 32, 32>}, {transform_indices = @transform_2, window_bounds = array<i64: 1, 32>}, {transform_indices = @transform_3, window_bounds = array<i64: 16, 32>}]} {
    %c0_i32 = arith.constant 0 : i32
    %0 = arith.cmpi eq, %arg2, %c0_i32 : i32
    %1 = arith.extui %0 : i1 to i32
    %c0_i32_0 = arith.constant 0 : i32
    %2 = arith.cmpi ne, %1, %c0_i32_0 : i32
    scf.if %2 {
      %cst_10 = arith.constant 0.000000e+00 : f32
      %14 = vector.broadcast %cst_10 : f32 to vector<16x32xf32>
      %c0_11 = arith.constant 0 : index
      %c0_12 = arith.constant 0 : index
      %15 = vector.load %arg7[%c0_11, %c0_12] : memref<16x32xf32, #tpu.memory_space<vmem>>, vector<16x32xf32>
      tpu.vector_store %arg7[%c0_11, %c0_12], %14 {strides = array<i32>} : memref<16x32xf32, #tpu.memory_space<vmem>>, vector<16x32xf32>,
    } else {
    }
    %c0 = arith.constant 0 : index
    %c0_1 = arith.constant 0 : index
    %3 = vector.load %arg7[%c0, %c0_1] : memref<16x32xf32, #tpu.memory_space<vmem>>, vector<16x32xf32>
    %c0_2 = arith.constant 0 : index
    %c0_3 = arith.constant 0 : index
    %4 = vector.load %arg3[%c0_2, %c0_3] : memref<16x32xf32, #tpu.memory_space<vmem>>, vector<16x32xf32>
    %5 = arith.truncf %4 : vector<16x32xf32> to vector<16x32xbf16>
    %c0_4 = arith.constant 0 : index
    %c0_5 = arith.constant 0 : index
    %6 = vector.load %arg4[%c0_4, %c0_5] : memref<32x32xf32, #tpu.memory_space<vmem>>, vector<32x32xf32>
    %7 = arith.truncf %6 : vector<32x32xf32> to vector<32x32xbf16>
    %cst = arith.constant dense<0.000000e+00> : vector<16x32xf32>
    %8 = tpu.matmul %5, %7, %cst {dimension_numbers = #tpu.dot_dimension_numbers<[1], [0], [0], [1], [0, 0, 1, 1], [], []>} : vector<16x32xbf16>, vector<32x32xbf16>, vector<16x32xf32> -> vector<16x32xf32>
    %9 = arith.addf %3, %8 : vector<16x32xf32>
    %c0_6 = arith.constant 0 : index
    %c0_7 = arith.constant 0 : index
    %10 = vector.load %arg7[%c0_6, %c0_7] : memref<16x32xf32, #tpu.memory_space<vmem>>, vector<16x32xf32>
    tpu.vector_store %arg7[%c0_6, %c0_7], %9 {strides = array<i32>} : memref<16x32xf32, #tpu.memory_space<vmem>>, vector<16x32xf32>,
    %c0_i32_8 = arith.constant 0 : i32
    %11 = arith.cmpi eq, %arg2, %c0_i32_8 : i32
    %12 = arith.extui %11 : i1 to i32
    %c0_i32_9 = arith.constant 0 : i32
    %13 = arith.cmpi ne, %12, %c0_i32_9 : i32
    scf.if %13 {
      %c0_10 = arith.constant 0 : index
      %c0_11 = arith.constant 0 : index
      %14 = vector.load %arg7[%c0_10, %c0_11] : memref<16x32xf32, #tpu.memory_space<vmem>>, vector<16x32xf32>
      %c0_12 = arith.constant 0 : index
      %c0_13 = arith.constant 0 : index
      %15 = vector.load %arg5[%c0_12, %c0_13] : memref<1x32xf32, #tpu.memory_space<vmem>>, vector<1x32xf32>
      %16 = vector.broadcast %15 : vector<1x32xf32> to vector<16x32xf32>
      %17 = arith.addf %14, %16 : vector<16x32xf32>
      %c0_14 = arith.constant 0 : index
      %c0_15 = arith.constant 0 : index
      %18 = vector.load %arg6[%c0_14, %c0_15] : memref<16x32xf32, #tpu.memory_space<vmem>>, vector<16x32xf32>
      tpu.vector_store %arg6[%c0_14, %c0_15], %17 {strides = array<i32>} : memref<16x32xf32, #tpu.memory_space<vmem>>, vector<16x32xf32>,
    } else {
    }
    return
  }
  func.func @transform_0(%arg0: i32, %arg1: i32, %arg2: i32) -> (i32, i32) {
    %c0_i32 = arith.constant 0 : i32
    return %arg0, %arg2 : i32, i32
  }
  func.func @transform_1(%arg0: i32, %arg1: i32, %arg2: i32) -> (i32, i32) {
    %c0_i32 = arith.constant 0 : i32
    return %arg2, %arg1 : i32, i32
  }
  func.func @transform_2(%arg0: i32, %arg1: i32, %arg2: i32) -> (i32, i32) {
    %c0_i32 = arith.constant 0 : i32
    %c0_i32_0 = arith.constant 0 : i32
    return %c0_i32, %arg1 : i32, i32
  }
  func.func @transform_3(%arg0: i32, %arg1: i32, %arg2: i32) -> (i32, i32) {
    %c0_i32 = arith.constant 0 : i32
    return %arg0, %arg1 : i32, i32
  }
}

</mosaic_0001>

<bundles_post_ra>
// kernel: tpu_custom_call.1
= control target key start
LH: loop header
LB: loop body
LE: loop exit
PB: predicated region body
PF: predicated region fallthrough
CT: control target
= control target key end

     0   :  { %8 = vsyncpa [#allocation4], 0  ;;  %s319_s0 = inlined_call_operand.hbm [shape: f32[16,32], index: 0, kind: input, shape index: {}]   ;;  %s320_s1 = inlined_call_operand.hbm [shape: f32[32,32], index: 1, kind: input, shape index: {}]   ;;  %s321_s2 = inlined_call_operand.vmem [shape: f32[1,32], index: 2, kind: input, shape index: {}]   ;;  %s322_s3 = inlined_call_operand.hbm [shape: f32[16,32], index: 3, kind: output, shape index: {}]  }
   0x1   :  { %9 = vsyncpa [#allocation7], 0 }
   0x2   :  { %10 = vsyncpa [#allocation5], 0  ;;  %s237_s12 = smov [#allocation3]   ;;  %s165_s16 = scalar_lea.hbm %s319_s0, 256 }
   0x3   :  { %s16_s13 = sshll.u32 %s237_s12, 4  ;;  %p166_p0 = scmp.ne.s32.totalorder %s319_s0, %s165_s16  ;;  %s17_s13 = int_to_ptr.vmem [resolvable:$true] %s16_s13 }
   0x4   :  { %p169_p1 = scmp.lt.u32.totalorder %s165_s16, %s319_s0 }
   0x6   :  { %p171_p2 = pnand %p169_p1, %p166_p0 }
   0x8   :  { %174 = shalt.err (!%p171_p2)
}
   0x9   :  { %s175_s21 = scalar_lea.vmem %s17_s13, 256  ;;  %p180_p4 = scmp.lt.s32.totalorder %s17_s13, %s17_s13 }
   0xa   :  { %p176_p3 = scmp.ne.s32.totalorder %s17_s13, %s175_s21  ;;  %p181_p5 = scmp.lt.s32.totalorder %s175_s21, %s175_s21 }
   0xc   :  { %p182_p6 = por %p181_p5, %p180_p4 }
   0xe   :  { %p183_p7 = pnand %p182_p6, %p176_p3 }
  0x10   :  { %186 = shalt.err (!%p183_p7)
}
  0x11   :  { %s238_s22 = smov 128   ;;  %s239_s23 = smov 8  }
  0x12   :  { %22 = dma.hbm_to_vmem [thread:$0]  %s319_s0, 256, %s17_s13, [#allocation4], %s238_s22, %s238_s22, %s239_s23  }
  0x13   :  { %s240_s26 = smov [#allocation6]   ;;  %s187_s30 = scalar_lea.hbm %s320_s1, 512 }
  0x14   :  { %s28_s27 = sshll.u32 %s240_s26, 4  ;;  %p188_p8 = scmp.ne.s32.totalorder %s320_s1, %s187_s30  ;;  %s29_s27 = int_to_ptr.vmem [resolvable:$true] %s28_s27 }
  0x15   :  { %p191_p9 = scmp.lt.u32.totalorder %s187_s30, %s320_s1 }
  0x17   :  { %p193_p10 = pnand %p191_p9, %p188_p8 }
  0x19   :  { %196 = shalt.err (!%p193_p10)
}
  0x1a   :  { %s197_s8 = scalar_lea.vmem %s29_s27, 512  ;;  %p202_p12 = scmp.lt.s32.totalorder %s29_s27, %s29_s27 }
  0x1b   :  { %p198_p11 = scmp.ne.s32.totalorder %s29_s27, %s197_s8  ;;  %p203_p13 = scmp.lt.s32.totalorder %s197_s8, %s197_s8 }
  0x1d   :  { %p204_p0 = por %p203_p13, %p202_p12 }
  0x1f   :  { %p205_p1 = pnand %p204_p0, %p198_p11 }
  0x21   :  { %208 = shalt.err (!%p205_p1)
}
  0x22   :  { %34 = dma.hbm_to_vmem [thread:$0]  %s320_s1, 512, %s29_s27, [#allocation7], %s238_s22, %s238_s22, %s239_s23  }
  0x23   :  { %231 = dma.done.wait [#allocation4], 256  }
  0x24   :  { %232 = vsyncadd [#allocation4], 4294967040 }
  0x25   :  { %233 = dma.done.wait [#allocation7], 512  }
  0x26   :  { %234 = vsyncadd [#allocation7], 4294966784  ;;  %vm48_vm0 = vcmask 261120   ;;  %v241_v0 = vmov 0.0   ;;  %vm242_vm1 = vmmov 0   ;;  %v56_v1 = vld [vmem:[#allocation6] sm:$0xff] }
  0x27   :  { %150 = vmatprep.subr.bf16.mxu0 %v241_v0  ;;  %154 = vmatprep.mubr.msk.bf16.mxu0 %vm242_vm1, %v241_v0  ;;  %49 = vst.msk [vmem:[#allocation2] sm:$0xff] %vm48_vm0, %v241_v0  ;;  %50 = vst.msk [vmem:[#allocation2 + $0x8] sm:$0xff] %vm48_vm0, %v241_v0  ;;  %v57_v2 = vld [vmem:[#allocation6 + $0x8] sm:$0xff]  ;;  %v58_v3 = vld [vmem:[#allocation6 + $0x10] sm:$0xff]  ;;  %s243_s11 = smov [#allocation8]  }
  0x28   :  { %v60_v4 = vpack.c.bf16 %v57_v2, %v56_v1  ;;  %v59_v5 = vld [vmem:[#allocation6 + $0x18] sm:$0xff]  ;;  %v53_v7 = vld [vmem:[#allocation3] sm:$0xff]  ;;  %v146_v18 = vld [vmem:[%s321_s2] ss:$0 sm:$0xff]  ;;  %s132_s12 = sshll.u32 %s243_s11, 4  ;;  %s133_s12 = int_to_ptr.vmem [resolvable:$true] %s132_s12 }
  0x29   :  { %v61_v6 = vpack.c.bf16 %v59_v5, %v58_v3  ;;  %v54_v8 = vld [vmem:[#allocation3 + $0x8] sm:$0xff]  ;;  %s209_s13 = scalar_lea.vmem %s133_s12, 256  ;;  %p214_p3 = scmp.lt.s32.totalorder %s133_s12, %s133_s12 }
  0x2a   :  { %151 = vmatpush3.bf16.msra.mxu0 %v60_v4  ;;  %v55_v9 = vpack.c.bf16 %v54_v8, %v53_v7  ;;  %p210_p2 = scmp.ne.s32.totalorder %s133_s12, %s209_s13  ;;  %p215_p4 = scmp.lt.s32.totalorder %s209_s13, %s209_s13 }
  0x2b   :  { %152 = vmatprep.subr.bf16.mxu0 %v241_v0 }
  0x2c   :  { %p216_p5 = por %p215_p4, %p214_p3 }
  0x2e   :  { %153 = vmatpush3.bf16.msra.mxu0 %v61_v6  ;;  %v51_v10 = vld [vmem:[#allocation2] sm:$0xff]  ;;  %v52_v12 = vld [vmem:[#allocation2 + $0x8] sm:$0xff]  ;;  %p217_p6 = pnand %p216_p5, %p210_p2 }
  0x31   :  { %155 = vmatmul.mubr.msk.bf16.vlgmr.msra.gmra.mrb[0].mxu0 %vm48_vm0, %v55_v9 }
 0x104   :  { %v100_v11 = vpop.f32.mrb[0].mxu0 }
 0x105   :  { %v107_v13 = vadd.f32 %v100_v11, %v51_v10  ;;  %v156_v14 = vpop.f32.mrb[1].mxu0 }
 0x106   :  { %v103_v15 = vpop.f32.mrb[2].mxu0 }
 0x107   :  { %109 = vst.msk [vmem:[#allocation2] sm:$0xff] %vm48_vm0, %v107_v13  ;;  %v108_v16 = vadd.f32 %v103_v15, %v52_v12  ;;  %v157_v17 = vpop.f32.mrb[3].mxu0 }
 0x109   :  { %110 = vst.msk [vmem:[#allocation2 + $0x8] sm:$0xff] %vm48_vm0, %v108_v16 }
 0x10e   :  { %v114_v19 = vld [vmem:[#allocation2] sm:$0xff] }
 0x10f   :  { %v123_v20 = vadd.f32 %v146_v18, %v114_v19 }
 0x110   :  { %v115_v21 = vld [vmem:[#allocation2 + $0x8] sm:$0xff] }
 0x111   :  { %v124_v22 = vadd.f32 %v146_v18, %v115_v21  ;;  %125 = vst.msk [vmem:[#allocation8] sm:$0xff] %vm48_vm0, %v123_v20 }
 0x113   :  { %126 = vst.msk [vmem:[#allocation8 + $0x8] sm:$0xff] %vm48_vm0, %v124_v22 }
 0x114   :  { %220 = shalt.err (!%p217_p6)
}
 0x115   :  { %s221_s15 = scalar_lea.hbm %s322_s3, 256 }
 0x116   :  { %p222_p7 = scmp.ne.s32.totalorder %s322_s3, %s221_s15  ;;  %p225_p8 = scmp.lt.u32.totalorder %s221_s15, %s322_s3 }
 0x118   :  { %p227_p9 = pnand %p225_p8, %p222_p7 }
 0x11a   :  { %230 = shalt.err (!%p227_p9)
}
 0x11b   :  { %138 = dma.vmem_to_hbm [thread:$0]  %s133_s12, 256, %s322_s3, [#allocation5], %s238_s22, %s238_s22, %s239_s23  }
 0x11c   :  { %235 = dma.done.wait [#allocation5], 256  }
 0x11d   :  { %236 = vsyncadd [#allocation5], 4294967040 }
 0x11e   :  { %142 = vsyncpa [#allocation4], 1 }
 0x11f   :  { %143 = vsyncpa [#allocation7], 1 }
 0x120   :  { %144 = vsyncpa [#allocation5], 1 }

</bundles_post_ra>
